<compile_context>
chip_gen: v5e
topology: v5e:2x2
jax: 0.10.0
libtpu: 0.0.40
codegen_flags: <defaults>
</compile_context>

<pallas_src>
import functools

import numpy as np
import jax
import jax.numpy as jnp
from jax.experimental import pallas as pl
from jax.experimental.pallas import tpu as pltpu

LANE = 128
VMEM_LIMIT = 32 * 1024 * 1024      # scoped-VMEM limit requested from Mosaic
VMEM_BUDGET = 20 * 1024 * 1024     # conservative per-grid-step budget (v7x: 64 MiB / TC)


def _round_up(x, m):
    return (x + m - 1) // m * m


def _lane_bytes(cin, cout):
    # Rough per-lane VMEM footprint of one grid step (double-buffered IO + temporaries).
    return (4 * cin        # bf16 input block, double-buffered
            + 2 * cin      # bf16 DMA slab (tiled path)
            + 8 * cin      # f32 cast copy + one rolled temporary
            + 36 * cin     # f32 xcat scratch (K = 9*Cin)
            + 4 * cout     # f32 matmul result
            + 4 * cout)    # bf16 output block, double-buffered


def _auto_lane_tile(cin, cout, p):
    """Largest lane tile (multiple of 128) that fits the VMEM budget; whole image if possible."""
    max_tl = _round_up(p, LANE)
    w_bytes = 4 * cout * (9 * cin + 1)
    fit = max(LANE, ((VMEM_BUDGET - w_bytes) // _lane_bytes(cin, cout)) // LANE * LANE)
    tl = min(max_tl, fit)
    # Perf review: never go below 512 lanes unless the whole padded image is smaller.
    return max(tl, min(512, max_tl))


# ----------------------------- Pallas kernels ------------------------------- #
def _conv_kernel_whole(x_ref, w_ref, b_ref, o_ref, xcat_ref, *, shifts):
    # x_ref: (1, Cin, P) bf16 (flat spatially-padded image, lane-rounded)
    # w_ref: (Cout, 9*Cin) f32 ; b_ref: (Cout, 1) f32 ; o_ref: (1, Cout, P) bf16
    # xcat_ref: (9*Cin, P) f32 VMEM scratch
    cin = x_ref.shape[1]
    p = x_ref.shape[2]
    x = x_ref[0].astype(jnp.float32)                       # (Cin, P) f32
    for t, s in enumerate(shifts):                         # 9 static taps
        sh = (-s) % p                                      # roll so result[q] = x[q + s]
        r = x if sh == 0 else pltpu.roll(x, shift=sh, axis=1)
        xcat_ref[t * cin:(t + 1) * cin, :] = r             # wrap only hits cropped positions
    acc = jnp.dot(w_ref[...], xcat_ref[...], preferred_element_type=jnp.float32)
    o_ref[0] = (acc + b_ref[...]).astype(o_ref.dtype)      # bf16 store, f32 accum + bias


def _conv_kernel_tiled(x_hbm, w_ref, b_ref, o_ref, slab_ref, xcat_ref, sem,
                       *, shifts, g, tl):
    # Fallback for images too large for a single lane tile: the un-duplicated flat input
    # stays in HBM (pl.ANY); each grid step DMAs its overlapping (Cin, L) slab in-kernel.
    i = pl.program_id(0)
    j = pl.program_id(1)
    cin = slab_ref.shape[0]
    l = slab_ref.shape[1]
    start = pl.multiple_of(j * tl, LANE)
    cp = pltpu.make_async_copy(x_hbm.at[i, :, pl.ds(start, l)], slab_ref, sem)
    cp.start()
    cp.wait()
    x = slab_ref[...].astype(jnp.float32)                  # (Cin, L) f32
    for t, s in enumerate(shifts):
        sh = (-(g + s)) % l                                # result[q] = slab[q + g + s]
        r = x if sh == 0 else pltpu.roll(x, shift=sh, axis=1)
        xcat_ref[t * cin:(t + 1) * cin, :] = r[:, :tl]
    acc = jnp.dot(w_ref[...], xcat_ref[...], preferred_element_type=jnp.float32)
    o_ref[0] = (acc + b_ref[...]).astype(o_ref.dtype)


# ------------------------------ conv wrapper -------------------------------- #
def fused_conv3x3_same(x_nchw, w_flat, bias_col, *, lane_tile=None):
    """Fused 3x3 / stride 1 / pad 1 conv (all featSplit convs in one weight), NCHW in/out."""
    n, cin, h, w = x_nchw.shape
    cout = w_flat.shape[0]
    hp, wp = h + 2, w + 2
    p = hp * wp                                            # flat padded spatial size
    g = wp + 1                                             # max |flat shift| of a 3x3 tap
    shifts = tuple((dy - 1) * wp + (dx - 1) for dy in range(3) for dx in range(3))

    max_tl = _round_up(p, LANE)
    if lane_tile is None:
        tl = _auto_lane_tile(cin, cout, p)
    else:
        tl = min(_round_up(max(int(lane_tile), LANE), LANE), max_tl)
    t = -(-p // tl)
    p_out = t * tl

    # NCHW f32 -> bf16 -> spatially padded -> flat (N, Cin, P)
    xb = jnp.pad(x_nchw.astype(jnp.bfloat16), ((0, 0), (0, 0), (1, 1), (1, 1)))
    xf = xb.reshape(n, cin, p)

    flops = 2 * n * p_out * 9 * cin * cout
    bytes_acc = n * cin * p * 2 + n * cout * p_out * 2 + w_flat.size * 4 + bias_col.size * 4
    cost = pl.CostEstimate(flops=flops, transcendentals=0, bytes_accessed=bytes_acc)

    if t == 1:
        # Fast path: whole lane-rounded padded image per grid step (BlockSpec pipelining).
        x_in = jnp.pad(xf, ((0, 0), (0, 0), (0, p_out - p)))
        kernel = functools.partial(_conv_kernel_whole, shifts=shifts)
        out = pl.pallas_call(
            kernel,
            out_shape=jax.ShapeDtypeStruct((n, cout, p_out), jnp.bfloat16),
            grid=(n,),
            in_specs=[
                pl.BlockSpec((1, cin, p_out), lambda i: (i, 0, 0)),
                pl.BlockSpec((cout, 9 * cin), lambda i: (0, 0)),   # VMEM-resident weights
                pl.BlockSpec((cout, 1), lambda i: (0, 0)),
            ],
            out_specs=pl.BlockSpec((1, cout, p_out), lambda i: (i, 0, 0)),
            scratch_shapes=[pltpu.VMEM((9 * cin, p_out), jnp.float32)],
            compiler_params=pltpu.CompilerParams(
                dimension_semantics=("parallel",),
                vmem_limit_bytes=VMEM_LIMIT),
            cost_estimate=cost,
        )(x_in, w_flat, bias_col)
    else:
        # Tiled path: un-duplicated input in HBM, overlapping slabs fetched by in-kernel DMA.
        l = _round_up(tl + 2 * g, LANE)
        lh = (t - 1) * tl + l
        x_in = jnp.pad(xf, ((0, 0), (0, 0), (g, lh - g - p)))
        kernel = functools.partial(_conv_kernel_tiled, shifts=shifts, g=g, tl=tl)
        out = pl.pallas_call(
            kernel,
            out_shape=jax.ShapeDtypeStruct((n, cout, p_out), jnp.bfloat16),
            grid=(n, t),
            in_specs=[
                pl.BlockSpec(memory_space=pl.ANY),                 # raw HBM, no auto-DMA
                pl.BlockSpec((cout, 9 * cin), lambda i, j: (0, 0)),
                pl.BlockSpec((cout, 1), lambda i, j: (0, 0)),
            ],
            out_specs=pl.BlockSpec((1, cout, tl), lambda i, j: (i, 0, j)),
            scratch_shapes=[
                pltpu.VMEM((cin, l), jnp.bfloat16),
                pltpu.VMEM((9 * cin, tl), jnp.float32),
                pltpu.SemaphoreType.DMA,
            ],
            compiler_params=pltpu.CompilerParams(
                dimension_semantics=("parallel", "parallel"),
                vmem_limit_bytes=VMEM_LIMIT),
            cost_estimate=cost,
        )(x_in, w_flat, bias_col)

    out = out[:, :, :p].reshape(n, cout, hp, wp)           # bf16 crop (cheap)
    return out[:, :, 1:1 + h, 1:1 + w]


# ------------------------------- featSplit ---------------------------------- #
def init_feat_split(key, in_channel, cfg):
    n_clusters = cfg[2]
    out_channel = cfg[1]
    assert in_channel % n_clusters == 0
    assert out_channel % (n_clusters + 1) == 0
    cin_c = in_channel // n_clusters
    cout_c = out_channel // (n_clusters + 1)
    assert cout_c % n_clusters == 0, "outer conv needs nIdx*nClusters == out_channel/(nClusters+1)"
    n_idx = cout_c // n_clusters
    assert n_idx <= cin_c

    keys = jax.random.split(key, 2 * n_clusters + 3)
    inner = []
    s_in = 1.0 / np.sqrt(cin_c * 9)
    for i in range(n_clusters):
        wi = jax.random.uniform(keys[2 * i], (cout_c, cin_c, 3, 3), jnp.float32, -s_in, s_in)
        bi = jax.random.uniform(keys[2 * i + 1], (cout_c,), jnp.float32, -s_in, s_in)
        inner.append((wi, bi))
    s_out = 1.0 / np.sqrt(cout_c * 9)
    w_out = jax.random.uniform(keys[-3], (cout_c, cout_c, 3, 3), jnp.float32, -s_out, s_out)
    b_out = jax.random.uniform(keys[-2], (cout_c,), jnp.float32, -s_out, s_out)

    # TODO(synk): PyTorch shuffles the channel index on host with random.shuffle; we use a
    # deterministic jax.random.permutation (synthetic weights, not checkpoint-compatible).
    index = np.asarray(jax.random.permutation(keys[-1], cin_c))[:n_idx]

    # Fused weight over the ORIGINAL input channels only:
    #  * block-diagonal inner convs,
    #  * outer conv folded onto the channels it actually reads (global_x channels are
    #    exact copies of x channels, so this is mathematically identical by linearity).
    w_fused = jnp.zeros((out_channel, in_channel, 3, 3), jnp.float32)
    for i in range(n_clusters):
        w_fused = w_fused.at[i * cout_c:(i + 1) * cout_c,
                             i * cin_c:(i + 1) * cin_c].set(inner[i][0])
    for i in range(n_clusters):
        for j in range(n_idx):
            src = i * cin_c + int(index[j])                 # original channel feeding aug ch i*n_idx+j
            w_fused = w_fused.at[n_clusters * cout_c:, src].add(w_out[:, i * n_idx + j])
    b_fused = jnp.concatenate([b for _, b in inner] + [b_out])

    # Kernel-ready layouts, prepared once: (Cout, 9*Cin) with column order (dy*3+dx)*Cin + c.
    w_flat = jnp.transpose(w_fused, (0, 2, 3, 1)).reshape(out_channel, 9 * in_channel)

    return {
        "n_clusters": n_clusters,
        "index": index,
        "w_flat": w_flat.astype(jnp.float32),
        "bias": b_fused.reshape(out_channel, 1).astype(jnp.float32),
        # original per-conv weights kept for the pure-JAX reference
        "inner": inner,
        "outer": (w_out, b_out),
    }


def feat_split_forward(params, x, *, lane_tile=None):
    # torch.chunk + index_select + cat are folded into the fused weight at init time,
    # so the forward is a single fused conv over the raw input.
    return fused_conv3x3_same(x, params["w_flat"], params["bias"], lane_tile=lane_tile)


# ------------------------------- reference ---------------------------------- #
def _ref_conv(x, w, b):
    y = jax.lax.conv_general_dilated(
        x, w, (1, 1), "SAME", dimension_numbers=("NCHW", "OIHW", "NCHW"))
    return y + b[None, :, None, None]


def _ref_forward(params, x):
    n_clusters = params["n_clusters"]
    chunks = jnp.split(x, n_clusters, axis=1)
    outs = [_ref_conv(chunks[i], *params["inner"][i]) for i in range(n_clusters)]
    idx = params["index"]
    global_x = jnp.concatenate([c[:, idx, :, :] for c in chunks], axis=1)
    outs.append(_ref_conv(global_x, *params["outer"]))
    return jnp.concatenate(outs, axis=1)


# --------------------------------- main -------------------------------------- #
if __name__ == "__main__":
    key = jax.random.PRNGKey(0)
    k_x, k_p = jax.random.split(key)

    in_channel = 4
    cfg = [in_channel, 12, 2]          # cfg[1] = out_channel, cfg[2] = nClusters
    x = jax.random.normal(k_x, (2, in_channel, 16, 16), jnp.float32)

    params = init_feat_split(k_p, in_channel, cfg)
    ref = jax.block_until_ready(_ref_forward(params, x))

    # Fast path: whole lane-rounded padded image per grid step.
    fwd = jax.jit(lambda xx: feat_split_forward(params, xx))
    out = jax.block_until_ready(fwd(x))
    assert out.shape == (2, cfg[1], 16, 16), out.shape
    np.testing.assert_allclose(np.asarray(out).astype(np.float32), np.asarray(ref),
                               rtol=5e-2, atol=5e-2)

    # Also exercise the lane-tiled fallback (in-kernel DMA of overlapping slabs, no host dup).
    fwd_tiled = jax.jit(lambda xx: feat_split_forward(params, xx, lane_tile=128))
    out_tiled = jax.block_until_ready(fwd_tiled(x))
    np.testing.assert_allclose(np.asarray(out_tiled).astype(np.float32), np.asarray(ref),
                               rtol=5e-2, atol=5e-2)

    print("KERNEL_OK")
</pallas_src>

<mosaic_0001>
module attributes {stable_mosaic.version = 11 : i64} {
  func.func @_conv_kernel_whole(%arg0: i32, %arg1: memref<1x4x384xbf16, #tpu.memory_space<vmem>>, %arg2: memref<12x36xf32, #tpu.memory_space<vmem>>, %arg3: memref<12x1xf32, #tpu.memory_space<vmem>>, %arg4: memref<1x12x384xbf16, #tpu.memory_space<vmem>>, %arg5: memref<36x384xf32, #tpu.memory_space<vmem>>) attributes {dimension_semantics = [#tpu.dimension_semantics<parallel>], iteration_bounds = array<i64: 2>, scalar_prefetch = 0 : i64, scratch_operands = 1 : i64, tpu.core_type = #tpu.core_type<tc>, window_params = [{transform_indices = @transform_0, window_bounds = array<i64: 1, 4, 384>}, {pipeline_mode = #tpu.pipeline_mode<synchronous>, transform_indices = @transform_1, window_bounds = array<i64: 12, 36>}, {pipeline_mode = #tpu.pipeline_mode<synchronous>, transform_indices = @transform_2, window_bounds = array<i64: 12, 1>}, {transform_indices = @transform_3, window_bounds = array<i64: 1, 12, 384>}]} {
    %c0 = arith.constant 0 : index
    %c0_0 = arith.constant 0 : index
    %c0_1 = arith.constant 0 : index
    %0 = vector.load %arg1[%c0, %c0_0, %c0_1] : memref<1x4x384xbf16, #tpu.memory_space<vmem>>, vector<1x4x384xbf16>
    %1 = vector.shape_cast %0 : vector<1x4x384xbf16> to vector<4x384xbf16>
    %2 = arith.extf %1 : vector<4x384xbf16> to vector<4x384xf32>
    %c19_i32 = arith.constant 19 : i32
    %3 = tpu.dynamic_rotate %2 by %c19_i32 dim 1 : vector<4x384xf32>, i32 -> vector<4x384xf32>
    %c0_2 = arith.constant 0 : index
    %c0_3 = arith.constant 0 : index
    %4 = vector.load %arg5[%c0_2, %c0_3] : memref<36x384xf32, #tpu.memory_space<vmem>>, vector<4x384xf32>
    tpu.vector_store %arg5[%c0_2, %c0_3], %3 {strides = array<i32>} : memref<36x384xf32, #tpu.memory_space<vmem>>, vector<4x384xf32>,
    %c18_i32 = arith.constant 18 : i32
    %5 = tpu.dynamic_rotate %2 by %c18_i32 dim 1 : vector<4x384xf32>, i32 -> vector<4x384xf32>
    %c4 = arith.constant 4 : index
    %c0_4 = arith.constant 0 : index
    %6 = vector.load %arg5[%c4, %c0_4] : memref<36x384xf32, #tpu.memory_space<vmem>>, vector<4x384xf32>
    tpu.vector_store %arg5[%c4, %c0_4], %5 {strides = array<i32>} : memref<36x384xf32, #tpu.memory_space<vmem>>, vector<4x384xf32>,
    %c17_i32 = arith.constant 17 : i32
    %7 = tpu.dynamic_rotate %2 by %c17_i32 dim 1 : vector<4x384xf32>, i32 -> vector<4x384xf32>
    %c8 = arith.constant 8 : index
    %c0_5 = arith.constant 0 : index
    %8 = vector.load %arg5[%c8, %c0_5] : memref<36x384xf32, #tpu.memory_space<vmem>>, vector<4x384xf32>
    tpu.vector_store %arg5[%c8, %c0_5], %7 {strides = array<i32>} : memref<36x384xf32, #tpu.memory_space<vmem>>, vector<4x384xf32>,
    %c1_i32 = arith.constant 1 : i32
    %9 = tpu.dynamic_rotate %2 by %c1_i32 dim 1 : vector<4x384xf32>, i32 -> vector<4x384xf32>
    %c12 = arith.constant 12 : index
    %c0_6 = arith.constant 0 : index
    %10 = vector.load %arg5[%c12, %c0_6] : memref<36x384xf32, #tpu.memory_space<vmem>>, vector<4x384xf32>
    tpu.vector_store %arg5[%c12, %c0_6], %9 {strides = array<i32>} : memref<36x384xf32, #tpu.memory_space<vmem>>, vector<4x384xf32>,
    %c16 = arith.constant 16 : index
    %c0_7 = arith.constant 0 : index
    %11 = vector.load %arg5[%c16, %c0_7] : memref<36x384xf32, #tpu.memory_space<vmem>>, vector<4x384xf32>
    tpu.vector_store %arg5[%c16, %c0_7], %2 {strides = array<i32>} : memref<36x384xf32, #tpu.memory_space<vmem>>, vector<4x384xf32>,
    %c383_i32 = arith.constant 383 : i32
    %12 = tpu.dynamic_rotate %2 by %c383_i32 dim 1 : vector<4x384xf32>, i32 -> vector<4x384xf32>
    %c20 = arith.constant 20 : index
    %c0_8 = arith.constant 0 : index
    %13 = vector.load %arg5[%c20, %c0_8] : memref<36x384xf32, #tpu.memory_space<vmem>>, vector<4x384xf32>
    tpu.vector_store %arg5[%c20, %c0_8], %12 {strides = array<i32>} : memref<36x384xf32, #tpu.memory_space<vmem>>, vector<4x384xf32>,
    %c367_i32 = arith.constant 367 : i32
    %14 = tpu.dynamic_rotate %2 by %c367_i32 dim 1 : vector<4x384xf32>, i32 -> vector<4x384xf32>
    %c24 = arith.constant 24 : index
    %c0_9 = arith.constant 0 : index
    %15 = vector.load %arg5[%c24, %c0_9] : memref<36x384xf32, #tpu.memory_space<vmem>>, vector<4x384xf32>
    tpu.vector_store %arg5[%c24, %c0_9], %14 {strides = array<i32>} : memref<36x384xf32, #tpu.memory_space<vmem>>, vector<4x384xf32>,
    %c366_i32 = arith.constant 366 : i32
    %16 = tpu.dynamic_rotate %2 by %c366_i32 dim 1 : vector<4x384xf32>, i32 -> vector<4x384xf32>
    %c28 = arith.constant 28 : index
    %c0_10 = arith.constant 0 : index
    %17 = vector.load %arg5[%c28, %c0_10] : memref<36x384xf32, #tpu.memory_space<vmem>>, vector<4x384xf32>
    tpu.vector_store %arg5[%c28, %c0_10], %16 {strides = array<i32>} : memref<36x384xf32, #tpu.memory_space<vmem>>, vector<4x384xf32>,
    %c365_i32 = arith.constant 365 : i32
    %18 = tpu.dynamic_rotate %2 by %c365_i32 dim 1 : vector<4x384xf32>, i32 -> vector<4x384xf32>
    %c32 = arith.constant 32 : index
    %c0_11 = arith.constant 0 : index
    %19 = vector.load %arg5[%c32, %c0_11] : memref<36x384xf32, #tpu.memory_space<vmem>>, vector<4x384xf32>
    tpu.vector_store %arg5[%c32, %c0_11], %18 {strides = array<i32>} : memref<36x384xf32, #tpu.memory_space<vmem>>, vector<4x384xf32>,
    %c0_12 = arith.constant 0 : index
    %c0_13 = arith.constant 0 : index
    %20 = vector.load %arg2[%c0_12, %c0_13] : memref<12x36xf32, #tpu.memory_space<vmem>>, vector<12x36xf32>
    %c0_14 = arith.constant 0 : index
    %c0_15 = arith.constant 0 : index
    %21 = vector.load %arg5[%c0_14, %c0_15] : memref<36x384xf32, #tpu.memory_space<vmem>>, vector<36x384xf32>
    %cst = arith.constant dense<0.000000e+00> : vector<12x384xf32>
    %22 = tpu.matmul %20, %21, %cst {dimension_numbers = #tpu.dot_dimension_numbers<[1], [0], [0], [1], [0, 0, 1, 1], [], []>} : vector<12x36xf32>, vector<36x384xf32>, vector<12x384xf32> -> vector<12x384xf32>
    %c0_16 = arith.constant 0 : index
    %c0_17 = arith.constant 0 : index
    %23 = vector.load %arg3[%c0_16, %c0_17] : memref<12x1xf32, #tpu.memory_space<vmem>>, vector<12x1xf32>
    %24 = vector.broadcast %23 : vector<12x1xf32> to vector<12x384xf32>
    %25 = arith.addf %22, %24 : vector<12x384xf32>
    %26 = arith.truncf %25 : vector<12x384xf32> to vector<12x384xbf16>
    %c0_18 = arith.constant 0 : index
    %c0_19 = arith.constant 0 : index
    %c0_20 = arith.constant 0 : index
    %27 = vector.load %arg4[%c0_18, %c0_19, %c0_20] : memref<1x12x384xbf16, #tpu.memory_space<vmem>>, vector<1x12x384xbf16>
    %28 = vector.shape_cast %27 : vector<1x12x384xbf16> to vector<12x384xbf16>
    %29 = vector.shape_cast %26 : vector<12x384xbf16> to vector<1x12x384xbf16>
    tpu.vector_store %arg4[%c0_18, %c0_19, %c0_20], %29 {strides = array<i32>} : memref<1x12x384xbf16, #tpu.memory_space<vmem>>, vector<1x12x384xbf16>,
    return
  }
  func.func @transform_0(%arg0: i32) -> (i32, i32, i32) {
    %c0_i32 = arith.constant 0 : i32
    %c0_i32_0 = arith.constant 0 : i32
    %c0_i32_1 = arith.constant 0 : i32
    return %arg0, %c0_i32, %c0_i32_0 : i32, i32, i32
  }
  func.func @transform_1(%arg0: i32) -> (i32, i32) {
    %c0_i32 = arith.constant 0 : i32
    %c0_i32_0 = arith.constant 0 : i32
    %c0_i32_1 = arith.constant 0 : i32
    return %c0_i32, %c0_i32_0 : i32, i32
  }
  func.func @transform_2(%arg0: i32) -> (i32, i32) {
    %c0_i32 = arith.constant 0 : i32
    %c0_i32_0 = arith.constant 0 : i32
    %c0_i32_1 = arith.constant 0 : i32
    return %c0_i32, %c0_i32_0 : i32, i32
  }
  func.func @transform_3(%arg0: i32) -> (i32, i32, i32) {
    %c0_i32 = arith.constant 0 : i32
    %c0_i32_0 = arith.constant 0 : i32
    %c0_i32_1 = arith.constant 0 : i32
    return %arg0, %c0_i32, %c0_i32_0 : i32, i32, i32
  }
}

</mosaic_0001>

<bundles_post_ra>
// kernel: _lambda_.1
= control target key start
LH: loop header
LB: loop body
LE: loop exit
PB: predicated region body
PF: predicated region fallthrough
CT: control target
= control target key end

     0   :  { %s661_s12 = smov 0   ;;  %s786_s0 = inlined_call_operand.vmem [shape: bf16[2,4,384], index: 0, kind: input, shape index: {}]   ;;  %s787_s1 = inlined_call_operand.vmem [shape: f32[12,36], index: 1, kind: input, shape index: {}]   ;;  %s788_s2 = inlined_call_operand.vmem [shape: f32[12,1], index: 2, kind: input, shape index: {}]   ;;  %s789_s3 = inlined_call_operand.vmem [shape: bf16[2,12,384], index: 3, kind: output, shape index: {}]  }
   0x1 LB: > { %s580_s13 = sadd.s32 4294967295, %s630_s12   ;;  %p584_p0 = scmp.ge.s32.totalorder %s630_s12, 1  ;;  %s630_s12 = sphi %s661_s12, %s13_s12  }
   0x2   : > { %p137_p1 = scmp.lt.s32.totalorder %s630_s12, 3 }
   0x4   : > { %p138_p2 = pnand %p584_p0, %p137_p1 }
   0x5   : > { %p161_p3 = scmp.lt.s32.totalorder (!%p138_p2), %s580_s13, 1  ;;  %s632_s18 = smov (!%p138_p2), 19  }
   0x6   : > { %141 = sbr.rel (%p138_p2) target bundleno = 386 (0x182), region = 32  ;;  %s633_s19 = smov (!%p138_p2), 18  }
   0x7   : > { %s634_s20 = smov (!%p138_p2), 17   ;;  %s635_s21 = smov (!%p138_p2), 1  }
   0x8   : > { %s636_s22 = smov (!%p138_p2), 127   ;;  %s637_s23 = smov (!%p138_p2), 111  }
   0x9   : > { %s638_s24 = smov (!%p138_p2), 110   ;;  %s639_s25 = smov (!%p138_p2), 109  }
   0xb   : > { %s791_s13 = smov (!%p161_p3, %s580_s13), 1  ;;  %v191_v31 = vlaneseq  ;;  %vm438_vm8 = vcmask 1043456   ;;  %vm431_vm9 = vcmask 293888  }
   0xc   : > { %s603_s14 = smul.u32 6, %s791_s13 }
   0xd   : > { %v701_v32 = vand.u32 127, %v191_v31  ;;  %s604_s7 = smul.u32 24, %s791_s13 }
   0xe   : > { %s165_s17 = scalar_lea.vmem %s786_s0, %s603_s14 }
   0xf   : > { %v171_v0 = vld [vmem:[%s165_s17] sm:$0x3f]  ;;  %vm193_vm0 = vcmp.lt.s32.totalorder %v701_v32, 19  ;;  %vm215_vm1 = vcmp.lt.s32.totalorder %v701_v32, 18  ;;  %vm246_vm2 = vcmp.lt.s32.totalorder %v701_v32, 17  ;;  %vm268_vm3 = vcmp.lt.s32.totalorder %v701_v32, 1  ;;  %s170_s10 = scalar_lea.vmem %s789_s3, %s604_s7 }
  0x10   : > { %v173_v1 = vunpack.c.h.bf16 %v171_v0  ;;  %v675_v2 = vunpack.c.l.bf16 %v171_v0  ;;  %vm311_vm4 = vcmp.lt.s32.totalorder %v701_v32, 127  ;;  %vm342_vm5 = vcmp.lt.s32.totalorder %v701_v32, 111 }
  0x11   : > { %vm364_vm6 = vcmp.lt.s32.totalorder %v701_v32, 110  ;;  %vm395_vm7 = vcmp.lt.s32.totalorder %v701_v32, 109 }
  0x12   : > { %178 = vst [vmem:[#allocation1 + $0x10] ss:$2 sm:$0xff] %v173_v1 }
  0x13   : > { %176 = vst [vmem:[#allocation1] ss:$2 sm:$0xff] %v675_v2 }
  0x19   : > { %v181_v3 = vld.sshfl [vmem:[#allocation1 + $0x10] sm:$0xff pattern:$0x75316420] }
  0x1a   : > { %189 = vrot.lane.b32.xlu2 %v181_v3, %s632_s18  ;;  %202 = vst [vmem:[#allocation1 + $0x10] ss:$2 sm:$0xff] %v173_v1  ;;  %v180_v4 = vld.sshfl [vmem:[#allocation1 + $0x8] sm:$0xff pattern:$0x75316420] }
  0x1b   : > { %187 = vrot.lane.b32.xlu1 %v180_v4, %s632_s18  ;;  %v680_v5 = vld.sshfl [vmem:[#allocation1] sm:$0xff pattern:$0x75316420] }
  0x1c   : > { %200 = vst [vmem:[#allocation1] ss:$2 sm:$0xff] %v675_v2 }
  0x21   : > { %v205_v6 = vld.sshfl [vmem:[#allocation1 + $0x10] sm:$0xff pattern:$0x75316420] }
  0x22   : > { %213 = vrot.lane.b32.xlu2 %v205_v6, %s633_s19  ;;  %233 = vst [vmem:[#allocation1 + $0x10] ss:$2 sm:$0xff] %v173_v1 }
  0x23   : > { %v203_v7 = vld.sshfl [vmem:[#allocation1] sm:$0xff pattern:$0x75316420]  ;;  %v204_v8 = vld.sshfl [vmem:[#allocation1 + $0x8] sm:$0xff pattern:$0x75316420] }
  0x24   : > { %231 = vst [vmem:[#allocation1] ss:$2 sm:$0xff] %v675_v2  ;;  %211 = vrot.lane.b32.xlu1 %v204_v8, %s633_s19 }
  0x29   : > { %v236_v9 = vld.sshfl [vmem:[#allocation1 + $0x10] sm:$0xff pattern:$0x75316420] }
  0x2a   : > { %255 = vst [vmem:[#allocation1 + $0x10] ss:$2 sm:$0xff] %v173_v1 }
  0x2b   : > { %v235_v10 = vld.sshfl [vmem:[#allocation1 + $0x8] sm:$0xff pattern:$0x75316420]  ;;  %v234_v11 = vld.sshfl [vmem:[#allocation1] sm:$0xff pattern:$0x75316420] }
  0x2c   : > { %242 = vrot.lane.b32.xlu0 %v235_v10, %s634_s20  ;;  %253 = vst [vmem:[#allocation1] ss:$2 sm:$0xff] %v675_v2  ;;  %244 = vrot.lane.b32.xlu1 %v236_v9, %s634_s20 }
  0x31   : > { %v258_v12 = vld.sshfl [vmem:[#allocation1 + $0x10] sm:$0xff pattern:$0x75316420] }
  0x32   : > { %286 = vst [vmem:[#allocation1 + $0x10] ss:$2 sm:$0xff] %v173_v1 }
  0x33   : > { %v257_v13 = vld.sshfl [vmem:[#allocation1 + $0x8] sm:$0xff pattern:$0x75316420]  ;;  %v256_v14 = vld.sshfl [vmem:[#allocation1] sm:$0xff pattern:$0x75316420] }
  0x34   : > { %266 = vrot.lane.b32.xlu0 %v258_v12, %s635_s21  ;;  %264 = vrot.lane.b32.xlu2 %v257_v13, %s635_s21  ;;  %284 = vst [vmem:[#allocation1] ss:$2 sm:$0xff] %v675_v2 }
  0x39   : > { %v289_v15 = vld.sshfl [vmem:[#allocation1 + $0x10] sm:$0xff pattern:$0x75316420] }
  0x3a   : > { %298 = vst [vmem:[#allocation1 + $0x10] ss:$2 sm:$0xff] %v173_v1 }
  0x3b   : > { %295 = vst [vmem:[#allocation2 + $0x40] sm:$0xf] %v289_v15  ;;  %v287_v16 = vld.sshfl [vmem:[#allocation1] sm:$0xff pattern:$0x75316420] }
  0x3c   : > { %v288_v17 = vld.sshfl [vmem:[#allocation1 + $0x8] sm:$0xff pattern:$0x75316420]  ;;  %293 = vst [vmem:[#allocation2 + $0x8] sm:$0xf] %v287_v16 }
  0x3d   : > { %294 = vst [vmem:[#allocation2 + $0x48] sm:$0xf] %v288_v17  ;;  %v419_v17 = vld [vmem:[%s788_s2] sm:$0xff] }
  0x3e   : > { %296 = vst [vmem:[#allocation1] ss:$2 sm:$0xff] %v675_v2 }
  0x41   : > { %v301_v18 = vld.sshfl [vmem:[#allocation1 + $0x10] sm:$0xff pattern:$0x75316420] }
  0x42   : > { %329 = vst [vmem:[#allocation1 + $0x10] ss:$2 sm:$0xff] %v173_v1 }
  0x45   : > { %v300_v19 = vld.sshfl [vmem:[#allocation1 + $0x8] sm:$0xff pattern:$0x75316420]  ;;  %v299_v20 = vld.sshfl [vmem:[#allocation1] sm:$0xff pattern:$0x75316420] }
  0x46   : > { %307 = vrot.lane.b32.xlu0 %v300_v19, %s636_s22  ;;  %305 = vrot.lane.b32.xlu2 %v299_v20, %s636_s22  ;;  %327 = vst [vmem:[#allocation1] ss:$2 sm:$0xff] %v675_v2  ;;  %v640_v20 = vmov 0  }
  0x47   : > { %622 = vset.pattern.permute.xlu0 %v640_v20  ;;  %623 = vset.pattern.permute.xlu1 %v640_v20 }
  0x49   : > { %v332_v21 = vld.sshfl [vmem:[#allocation1 + $0x10] sm:$0xff pattern:$0x75316420] }
  0x4a   : > { %351 = vst [vmem:[#allocation1 + $0x10] ss:$2 sm:$0xff] %v173_v1  ;;  %340 = vrot.lane.b32.xlu1 %v332_v21, %s637_s23 }
  0x4d   : > { %v330_v22 = vld.sshfl [vmem:[#allocation1] sm:$0xff pattern:$0x75316420]  ;;  %v331_v23 = vld.sshfl [vmem:[#allocation1 + $0x8] sm:$0xff pattern:$0x75316420] }
  0x4e   : > { %309 = vrot.lane.b32.xlu2 %v301_v18, %s636_s22  ;;  %336 = vrot.lane.b32.xlu0 %v330_v22, %s637_s23  ;;  %349 = vst [vmem:[#allocation1] ss:$2 sm:$0xff] %v675_v2  ;;  %v420_v18 = vld [vmem:[%s788_s2 + $0x8] sm:$0xf] }
  0x51   : > { %v354_v24 = vld.sshfl [vmem:[#allocation1 + $0x10] sm:$0xff pattern:$0x75316420] }
  0x52   : > { %382 = vst [vmem:[#allocation1 + $0x10] ss:$2 sm:$0xff] %v173_v1 }
  0x55   : > { %v353_v25 = vld.sshfl [vmem:[#allocation1 + $0x8] sm:$0xff pattern:$0x75316420]  ;;  %v352_v26 = vld.sshfl [vmem:[#allocation1] sm:$0xff pattern:$0x75316420] }
  0x56   : > { %360 = vrot.lane.b32.xlu2 %v353_v25, %s638_s24  ;;  %358 = vrot.lane.b32.xlu0 %v352_v26, %s638_s24  ;;  %380 = vst [vmem:[#allocation1] ss:$2 sm:$0xff] %v675_v2 }
  0x59   : > { %v385_v29 = vld.sshfl [vmem:[#allocation1 + $0x10] sm:$0xff pattern:$0x75316420] }
  0x5d   : > { %v383_v27 = vld.sshfl [vmem:[#allocation1] sm:$0xff pattern:$0x75316420]  ;;  %v384_v28 = vld.sshfl [vmem:[#allocation1 + $0x8] sm:$0xff pattern:$0x75316420] }
  0x5e   : > { %262 = vrot.lane.b32.xlu2 %v256_v14, %s635_s21  ;;  %362 = vrot.lane.b32.xlu0 %v354_v24, %s638_s24 }
  0x5f   : > { %389 = vrot.lane.b32.xlu1 %v383_v27, %s639_s25 }
  0x66   : > { %185 = vrot.lane.b32.xlu2 %v680_v5, %s632_s18  ;;  %391 = vrot.lane.b32.xlu0 %v384_v28, %s639_s25 }
  0x67   : > { %393 = vrot.lane.b32.xlu1 %v385_v29, %s639_s25 }
  0x6e   : > { %209 = vrot.lane.b32.xlu0 %v203_v7, %s633_s19 }
  0x6f   : > { %338 = vrot.lane.b32.xlu1 %v331_v23, %s637_s23 }
  0x74   : > { %v190_v30 = vpop.permute.xlu2 %189 }
  0x76   : > { %423 = vperm.xlu0 %622, %v419_v17  }
  0x77   : > { %240 = vrot.lane.b32.xlu1 %v234_v11, %s634_s20 }
  0x7c   : > { %v704_v33 = vpop.permute.xlu2 %213 }
  0x7f   : > { %428 = vperm.xlu1 %623, %v420_v18  }
  0x8d   : > { %v188_v34 = vpop.permute.xlu1 %187 }
  0x8e   : > { %v194_v35 = vsel %vm193_vm0, %v188_v34, %v190_v30  ;;  %v265_v36 = vpop.permute.xlu2 %264 }
  0x8f   : > { %199 = vst [vmem:[#allocation2 + $0x58] sm:$0xf] %v194_v35 }
  0x96   : > { %v709_v37 = vpop.permute.xlu1 %211 }
  0x97   : > { %v216_v38 = vsel %vm215_vm1, %v709_v37, %v704_v33 }
  0x98   : > { %v224_v39 = vrot.slane %v216_v38, 4 }
  0x9a   : > { %230 = vst [vmem:[#allocation2 + $0x58] sm:$0xf0] %v224_v39 }
  0x9e   : > { %v716_v40 = vpop.permute.xlu0 %242  ;;  %v718_v41 = vpop.permute.xlu1 %244 }
  0x9f   : > { %v247_v42 = vsel %vm246_vm2, %v716_v40, %v718_v41 }
  0xa0   : > { %v306_v43 = vpop.permute.xlu2 %305  ;;  %252 = vst [vmem:[#allocation2 + $0x68] sm:$0xf] %v247_v42  ;;  %v402_v42 = vld [vmem:[%s787_s1] sm:$0xff] }
  0xa1   : > { %v406_v39 = vld [vmem:[#allocation2 + $0x58] sm:$0xff] }
  0xa6   : > { %v267_v44 = vpop.permute.xlu0 %266 }
  0xa7   : > { %v269_v45 = vsel %vm268_vm3, %v265_v36, %v267_v44 }
  0xa8   : > { %v310_v46 = vpop.permute.xlu2 %309  ;;  %v277_v47 = vrot.slane %v269_v45, 4 }
  0xa9   : > { %v314_v48 = vsel %vm311_vm4, %v310_v46, %v306_v43 }
  0xaa   : > { %v320_v49 = vrot.slane %v314_v48, 4  ;;  %283 = vst [vmem:[#allocation2 + $0x68] sm:$0xf0] %v277_v47 }
  0xac   : > { %326 = vst [vmem:[#allocation2 + $0x40] sm:$0xf0] %v320_v49 }
  0xb0   : > { %v361_v50 = vpop.permute.xlu2 %360 }
  0xb8   : > { %v308_v51 = vpop.permute.xlu0 %307  ;;  %v263_v52 = vpop.permute.xlu2 %262 }
  0xb9   : > { %v312_v53 = vsel %vm311_vm4, %v308_v51, %v310_v46  ;;  %v313_v54 = vsel %vm311_vm4, %v306_v43, %v308_v51  ;;  %v270_v55 = vsel %vm268_vm3, %v263_v52, %v265_v36  ;;  %v271_v56 = vsel %vm268_vm3, %v267_v44, %v263_v52  ;;  %v403_v46 = vld [vmem:[%s787_s1 + $0x8] sm:$0xf] }
  0xba   : > { %v318_v57 = vrot.slane %v313_v54, 4  ;;  %v319_v58 = vrot.slane %v312_v53, 4  ;;  %v275_v59 = vrot.slane %v271_v56, 4  ;;  %v276_v60 = vrot.slane %v270_v55, 4 }
  0xbc   : > { %324 = vst [vmem:[#allocation2 + $0x8] sm:$0xf0] %v318_v57  ;;  %v341_v61 = vpop.permute.xlu1 %340 }
  0xbd   : > { %325 = vst [vmem:[#allocation2 + $0x48] sm:$0xf0] %v319_v58 }
  0xbe   : > { %281 = vst [vmem:[#allocation2 + $0x18] sm:$0xf0] %v275_v59 }
  0xbf   : > { %282 = vst [vmem:[#allocation2 + $0x50] sm:$0xf0] %v276_v60 }
  0xc0   : > { %v337_v62 = vpop.permute.xlu0 %336  ;;  %v186_v63 = vpop.permute.xlu2 %185 }
  0xc1   : > { %v195_v0 = vsel %vm193_vm0, %v186_v63, %v188_v34  ;;  %v196_v1 = vsel %vm193_vm0, %v190_v30, %v186_v63  ;;  %v345_v2 = vsel %vm342_vm5, %v341_v61, %v337_v62  ;;  %v409_v34 = vld [vmem:[#allocation2 + $0x68] sm:$0xff] }
  0xc2   : > { %197 = vst [vmem:[#allocation2 + $0x30] sm:$0xf] %v196_v1 }
  0xc3   : > { %198 = vst [vmem:[#allocation2] sm:$0xf] %v195_v0  ;;  %v410_v43 = vld [vmem:[#allocation2 + $0x8] sm:$0xff] }
  0xc4   : > { %348 = vst [vmem:[#allocation2 + $0x38] sm:$0xf] %v345_v2  ;;  %v411_v32 = vld [vmem:[#allocation2 + $0x48] sm:$0xff] }
  0xc8   : > { %v359_v3 = vpop.permute.xlu0 %358 }
  0xc9   : > { %v366_v4 = vsel %vm364_vm6, %v359_v3, %v361_v50 }
  0xca   : > { %v371_v5 = vrot.slane %v366_v4, 4 }
  0xcc   : > { %377 = vst [vmem:[#allocation2 + $0x20] sm:$0xf0] %v371_v5 }
  0xd0   : > { %v363_v6 = vpop.permute.xlu0 %362 }
  0xd1   : > { %v365_v7 = vsel %vm364_vm6, %v361_v50, %v363_v6  ;;  %v367_v8 = vsel %vm364_vm6, %v363_v6, %v359_v3  ;;  %v390_v9 = vpop.permute.xlu1 %389 }
  0xd2   : > { %v372_v10 = vrot.slane %v365_v7, 4  ;;  %v373_v11 = vrot.slane %v367_v8, 4 }
  0xd4   : > { %378 = vst [vmem:[#allocation2 + $0x10] sm:$0xf0] %v372_v10 }
  0xd5   : > { %379 = vst [vmem:[#allocation2 + $0x38] sm:$0xf0] %v373_v11 }
  0xd8   : > { %v392_v12 = vpop.permute.xlu0 %391 }
  0xd9   : > { %v397_v13 = vsel %vm395_vm7, %v390_v9, %v392_v12  ;;  %v394_v14 = vpop.permute.xlu1 %393 }
  0xda   : > { %399 = vst [vmem:[#allocation2 + $0x60] sm:$0xf] %v397_v13  ;;  %v396_v15 = vsel %vm395_vm7, %v392_v12, %v394_v14  ;;  %v398_v16 = vsel %vm395_vm7, %v394_v14, %v390_v9 }
  0xdb   : > { %400 = vst [vmem:[#allocation2 + $0x70] sm:$0xf] %v396_v15 }
  0xdc   : > { %401 = vst [vmem:[#allocation2 + $0x28] sm:$0xf] %v398_v16  ;;  %v415_v31 = vld [vmem:[#allocation2 + $0x38] sm:$0xff] }
  0xe0   : > { %v210_v19 = vpop.permute.xlu0 %209 }
  0xe1   : > { %v217_v21 = vsel %vm215_vm1, %v210_v19, %v709_v37  ;;  %v218_v22 = vsel %vm215_vm1, %v704_v33, %v210_v19  ;;  %v339_v23 = vpop.permute.xlu1 %338  ;;  %v416_v24 = vld [vmem:[#allocation2 + $0x60] sm:$0xf] }
  0xe2   : > { %v222_v25 = vrot.slane %v218_v22, 4  ;;  %v223_v26 = vrot.slane %v217_v21, 4  ;;  %v344_v27 = vsel %vm342_vm5, %v337_v62, %v339_v23  ;;  %587 = vmatpush.msk.msra.mxu0 %vm438_vm8, %v416_v24  ;;  %598 = vmatpush.msk.msra.mxu3 %vm438_vm8, %v416_v24  ;;  %v417_v28 = vld [vmem:[#allocation2 + $0x70] sm:$0xf]  ;;  %v343_v29 = vsel %vm342_vm5, %v339_v23, %v341_v61  ;;  %v412_v33 = vld [vmem:[#allocation2 + $0x40] sm:$0xff] }
  0xe3   : > { %346 = vst [vmem:[#allocation2 + $0x20] sm:$0xf] %v344_v27  ;;  %590 = vmatpush.msk.msra.mxu1 %vm438_vm8, %v417_v28  ;;  %v418_v30 = vld [vmem:[#allocation2 + $0x28] sm:$0xf] }
  0xe4   : > { %228 = vst [vmem:[#allocation2 + $0x30] sm:$0xf0] %v222_v25  ;;  %593 = vmatpush.msk.msra.mxu2 %vm438_vm8, %v418_v30 }
  0xe5   : > { %229 = vst [vmem:[#allocation2] sm:$0xf0] %v223_v26 }
  0xe6   : > { %347 = vst [vmem:[#allocation2 + $0x10] sm:$0xf] %v343_v29  ;;  %506 = vmatpush.msra.mxu2 %v415_v31 }
  0xe8   : > { %507 = vmatpush.msra.mxu2 %v412_v33  ;;  %v424_v48 = vpop.permute.xlu0 %423 }
  0xe9   : > { %v241_v35 = vpop.permute.xlu1 %240 }
  0xea   : > { %508 = vmatpush.msra.mxu2 %v409_v34  ;;  %v248_v36 = vsel %vm246_vm2, %v241_v35, %v716_v40  ;;  %v249_v37 = vsel %vm246_vm2, %v718_v41, %v241_v35  ;;  %v413_v38 = vld [vmem:[#allocation2 + $0x20] sm:$0xff] }
  0xeb   : > { %250 = vst [vmem:[#allocation2 + $0x18] sm:$0xf] %v249_v37  ;;  %460 = vmatpush.msra.mxu0 %v413_v38  ;;  %599 = vmatpush.msra.mxu3 %v413_v38  ;;  %v404_v45 = vld [vmem:[#allocation2 + $0x30] sm:$0xff] }
  0xec   : > { %251 = vst [vmem:[#allocation2 + $0x50] sm:$0xf] %v248_v36  ;;  %509 = vmatpush.msra.mxu2 %v406_v39  ;;  %v405_v47 = vld [vmem:[#allocation2] sm:$0xff] }
  0xed   : > { %v414_v44 = vld [vmem:[#allocation2 + $0x10] sm:$0xff]  ;;  %461 = vmatpush.msra.mxu0 %v410_v43  ;;  %600 = vmatpush.msra.mxu3 %v410_v43 }
  0xee   : > { %483 = vmatpush.msra.mxu1 %v414_v44  ;;  %594 = vmatmul.msk.f32.vlgmr.msra.gmra.mxu2 %vm431_vm9, %v402_v42 }
  0xf0   : > { %484 = vmatpush.msra.mxu1 %v411_v32 }
  0xf1   : > { %v429_v57 = vpop.permute.xlu1 %428 }
  0xf2   : > { %v407_v40 = vld [vmem:[#allocation2 + $0x18] sm:$0xff] }
  0xf3   : > { %462 = vmatpush.msra.mxu0 %v407_v40  ;;  %601 = vmatpush.msra.mxu3 %v407_v40  ;;  %v408_v41 = vld [vmem:[#allocation2 + $0x50] sm:$0xff] }
  0xf4   : > { %485 = vmatpush.msra.mxu1 %v408_v41 }
  0xf5   : > { %463 = vmatpush.msra.mxu0 %v404_v45  ;;  %602 = vmatpush.msra.mxu3 %v404_v45 }
  0xf6   : > { %486 = vmatpush.msra.mxu1 %v405_v47  ;;  %588 = vmatmul.msk.f32.vlgmr.msra.gmra.mxu0 %vm431_vm9, %v402_v42 }
  0xf7   : > { %591 = vmatmul.msk.f32.vlgmr.msra.gmra.mxu1 %vm431_vm9, %v402_v42  ;;  %589 = vmatmul.msk.f32.vlgmr.msra.gmra.mxu3 %vm431_vm9, %v403_v46 }
  0xf8   : > { %595 = vmatmul.msk.f32.gmra.mxu2 %vm431_vm9, %v403_v46 }
  0xff   : > { %592 = vmatmul.msk.f32.gmra.mxu1 %vm431_vm9, %v403_v46 }
 0x171   : > { %v511_v49 = vpop.f32.mrf.mxu2 }
 0x172   : > { %v512_v50 = vadd.f32 %v511_v49, %v424_v48 }
 0x173   : > { %v465_v51 = vpop.f32.mrf.mxu0 }
 0x174   : > { %v466_v52 = vadd.f32 %v465_v51, %v424_v48  ;;  %v488_v53 = vpop.f32.mrf.mxu1  ;;  %v518_v54 = vpack.c.bf16 %v512_v50, %v512_v50 }
 0x175   : > { %v489_v55 = vadd.f32 %v488_v53, %v424_v48 }
 0x176   : > { %522 = vst [vmem:[%s170_s10 + $0x8] sm:$0xf] %v518_v54 }
 0x177   : > { %v517_v56 = vpack.c.bf16 %v489_v55, %v466_v52 }
 0x179   : > { %521 = vst [vmem:[%s170_s10] sm:$0xff] %v517_v56 }
 0x17a   : > { %v468_v58 = vpop.f32.mrf.mxu3 }
 0x17b   : > { %v514_v59 = vpop.f32.mrf.mxu2  ;;  %v469_v60 = vadd.f32 %v468_v58, %v429_v57 }
 0x17c   : > { %v491_v61 = vpop.f32.mrf.mxu1  ;;  %v515_v62 = vadd.f32 %v514_v59, %v429_v57 }
 0x17d   : > { %v492_v63 = vadd.f32 %v491_v61, %v429_v57 }
 0x17e   : > { %v520_v0 = vpack.c.bf16 %v515_v62, %v515_v62 }
 0x17f   : > { %v519_v1 = vpack.c.bf16 %v492_v63, %v469_v60 }
 0x180   : > { %524 = vst [vmem:[%s170_s10 + $0x14] sm:$0x3] %v520_v0 }
 0x181   : > { %523 = vst [vmem:[%s170_s10 + $0xc] sm:$0x33] %v519_v1 }
 0x182 PF: > { %s13_s12 = sadd.s32 1, %s630_s12  }
 0x183   : > { %p10_p4 = scmp.ge.s32.totalorder %s13_s12, 4  }
 0x185   :  { %12 = sbr.rel (!%p10_p4) target bundleno = 1 (0x1), region = 71 }

</bundles_post_ra>
